<compile_context>
chip_gen: v6e
topology: v6e:2x2x1
jax: 0.10.0
libtpu: 0.0.40
codegen_flags: <defaults>
</compile_context>

<pallas_src>
import math
import functools

import jax
import jax.numpy as jnp
from jax.experimental import pallas as pl
from jax.experimental.pallas import tpu as pltpu


def _round_up(v, n):
    return (v + n - 1) // n * n


def _arc_margin_kernel(x_ref, w_ref, label_ref, out_ref, *,
                       s, cos_m, sin_m, th, mm, easy_margin, apply_margin, tile_c):
    eps = 1e-12  # torch F.normalize default (clamp_min on the norm)

    x = x_ref[...]                                   # (TB, D), input dtype
    w = w_ref[...]                                   # (TC, D), weight dtype

    xf = x.astype(jnp.float32)
    wf = w.astype(jnp.float32)

    # 1 / max(||row||_2, eps)  ==  rsqrt(max(sum_sq, eps^2))   (EUP rsqrt, no sqrt+div)
    x_inv = jax.lax.rsqrt(
        jnp.maximum(jnp.sum(xf * xf, axis=-1, keepdims=True), eps * eps))      # (TB, 1)
    w_inv = jax.lax.rsqrt(
        jnp.maximum(jnp.sum(wf * wf, axis=-1, keepdims=True), eps * eps))      # (TC, 1)

    # Normalize the weight tile; keep matmul operands in the original dtype.
    wn = (wf * w_inv).astype(w.dtype)                # (TC, D)

    # raw = x @ wn^T : contract D (last dim of both) directly, f32 accumulation.
    raw = jax.lax.dot_general(
        x, wn,
        dimension_numbers=(((1,), (1,)), ((), ())),
        preferred_element_type=jnp.float32)          # (TB, TC)

    # Fold the input-row normalization into a per-row scale of the output tile.
    cosine = raw * x_inv                             # (TB, TC)

    sine = jnp.sqrt(jnp.clip(1.0 - cosine * cosine, 0.0, 1.0))
    phi = cosine * cos_m - sine * sin_m
    if easy_margin:
        phi = jnp.where(cosine > 0.0, phi, cosine)
    else:
        phi = jnp.where(cosine > th, phi, cosine - mm)

    if apply_margin:
        label = label_ref[...]                       # (TB, 1) int32
        col0 = pl.program_id(1) * tile_c             # global class offset of this C tile
        col_ids = col0 + jax.lax.broadcasted_iota(jnp.int32, cosine.shape, 1)
        one_hot = col_ids == label
        out = jnp.where(one_hot, phi, cosine) * s
    else:
        out = cosine * s

    out_ref[...] = out.astype(out_ref.dtype)


def arc_margin_product(x, weight, label, *, s=30.0, m=0.5, easy_margin=False,
                       is_train=True, block_b=None, block_c=None):
    """x: (B, D), weight: (C, D), label: (B,) int -> (B, C) f32 logits."""
    B, D = x.shape
    C, Dw = weight.shape
    assert D == Dw

    # Tile sizes: TB multiple of 8 (f32 sublanes), TC multiple of 128 (lane-dense stores,
    # matches the MXU). Wrapper pads B/C up to the tile grid; padded rows/cols are sliced off.
    TB = block_b if block_b is not None else min(128, _round_up(B, 8))
    TC = block_c if block_c is not None else min(512, _round_up(C, 128))
    Bp = _round_up(B, TB)
    Cp = _round_up(C, TC)

    label2d = label.reshape(B, 1).astype(jnp.int32)
    if Bp != B:
        x = jnp.pad(x, ((0, Bp - B), (0, 0)))
        label2d = jnp.pad(label2d, ((0, Bp - B), (0, 0)), constant_values=-1)
    if Cp != C:
        weight = jnp.pad(weight, ((0, Cp - C), (0, 0)))

    grid = (Bp // TB, Cp // TC)

    kernel = functools.partial(
        _arc_margin_kernel,
        s=float(s),
        cos_m=math.cos(m),
        sin_m=math.sin(m),
        th=math.cos(math.pi - m),
        mm=math.sin(math.pi - m) * m,
        easy_margin=bool(easy_margin),
        apply_margin=bool(is_train),
        tile_c=TC,
    )

    itemsize = jnp.dtype(x.dtype).itemsize
    cost = pl.CostEstimate(
        flops=int(2 * Bp * Cp * D),
        transcendentals=int(Bp * Cp + Bp + Cp),
        bytes_accessed=int(Bp * D * itemsize + Cp * D * itemsize + Bp * Cp * 4 + Bp * 4),
    )

    out = pl.pallas_call(
        kernel,
        out_shape=jax.ShapeDtypeStruct((Bp, Cp), jnp.float32),
        grid_spec=pltpu.PrefetchScalarGridSpec(
            num_scalar_prefetch=0,
            grid=grid,
            in_specs=[
                pl.BlockSpec((TB, D), lambda i, j: (i, 0)),   # x tile
                pl.BlockSpec((TC, D), lambda i, j: (j, 0)),   # weight tile
                pl.BlockSpec((TB, 1), lambda i, j: (i, 0)),   # labels for this B tile
            ],
            out_specs=pl.BlockSpec((TB, TC), lambda i, j: (i, j)),
        ),
        compiler_params=pltpu.CompilerParams(
            dimension_semantics=("parallel", "parallel"),
            vmem_limit_bytes=48 * 1024 * 1024,   # safe on v5e/v6e (128 MiB) and v7x (64 MiB)
        ),
        cost_estimate=cost,
    )(x, weight, label2d)

    return out[:B, :C]


def xavier_uniform(key, out_features, in_features):
    bound = math.sqrt(6.0 / (in_features + out_features))
    return jax.random.uniform(
        key, (out_features, in_features), jnp.float32, -bound, bound)


def _reference(x, weight, label, s, m, easy_margin, is_train):
    xn = x / jnp.maximum(jnp.linalg.norm(x, axis=-1, keepdims=True), 1e-12)
    wn = weight / jnp.maximum(jnp.linalg.norm(weight, axis=-1, keepdims=True), 1e-12)
    cosine = xn @ wn.T
    sine = jnp.sqrt(jnp.clip(1.0 - cosine ** 2, 0.0, 1.0))
    phi = cosine * math.cos(m) - sine * math.sin(m)
    if easy_margin:
        phi = jnp.where(cosine > 0.0, phi, cosine)
    else:
        phi = jnp.where(cosine > math.cos(math.pi - m), phi,
                        cosine - math.sin(math.pi - m) * m)
    if is_train:
        one_hot = jax.nn.one_hot(label, weight.shape[0], dtype=jnp.float32)
    else:
        one_hot = jnp.zeros_like(cosine)
    return (one_hot * phi + (1.0 - one_hot) * cosine) * s


if __name__ == "__main__":
    key = jax.random.PRNGKey(0)
    k_x, k_w, k_l = jax.random.split(key, 3)

    # Small but multi-tile shapes: 3 B-tiles of 8, 2 C-tiles of 128 (C padded 200 -> 256).
    batch = 24
    in_features = 32
    out_features = 200
    s, m = 30.0, 0.5

    x = jax.random.normal(k_x, (batch, in_features), jnp.float32)
    weight = xavier_uniform(k_w, out_features, in_features)
    label = jax.random.randint(k_l, (batch,), 0, out_features, jnp.int32)

    out = arc_margin_product(x, weight, label, s=s, m=m,
                             easy_margin=False, is_train=True,
                             block_b=8, block_c=128)
    jax.block_until_ready(out)

    ref = _reference(x, weight, label, s, m, easy_margin=False, is_train=True)
    assert out.shape == ref.shape
    assert jnp.allclose(out, ref, atol=1e-4, rtol=1e-5), float(jnp.max(jnp.abs(out - ref)))

    # Also exercise the eval path (one_hot disabled -> s * cosine).
    out_eval = arc_margin_product(x, weight, label, s=s, m=m,
                                  easy_margin=False, is_train=False,
                                  block_b=8, block_c=128)
    jax.block_until_ready(out_eval)
    ref_eval = _reference(x, weight, label, s, m, easy_margin=False, is_train=False)
    assert jnp.allclose(out_eval, ref_eval, atol=1e-4, rtol=1e-5)

    print("KERNEL_OK")
</pallas_src>

<mosaic_0001>
module attributes {stable_mosaic.version = 11 : i64} {
  func.func @_arc_margin_kernel(%arg0: i32, %arg1: i32, %arg2: memref<8x32xf32, #tpu.memory_space<vmem>>, %arg3: memref<128x32xf32, #tpu.memory_space<vmem>>, %arg4: memref<8x1xi32, #tpu.memory_space<vmem>>, %arg5: memref<8x128xf32, #tpu.memory_space<vmem>>) attributes {dimension_semantics = [#tpu.dimension_semantics<parallel>, #tpu.dimension_semantics<parallel>], iteration_bounds = array<i64: 3, 2>, scalar_prefetch = 0 : i64, scratch_operands = 0 : i64, tpu.core_type = #tpu.core_type<tc>, window_params = [{transform_indices = @transform_0, window_bounds = array<i64: 8, 32>}, {transform_indices = @transform_1, window_bounds = array<i64: 128, 32>}, {transform_indices = @transform_2, window_bounds = array<i64: 8, 1>}, {transform_indices = @transform_3, window_bounds = array<i64: 8, 128>}]} {
    %c0 = arith.constant 0 : index
    %c0_0 = arith.constant 0 : index
    %0 = vector.load %arg2[%c0, %c0_0] : memref<8x32xf32, #tpu.memory_space<vmem>>, vector<8x32xf32>
    %c0_1 = arith.constant 0 : index
    %c0_2 = arith.constant 0 : index
    %1 = vector.load %arg3[%c0_1, %c0_2] : memref<128x32xf32, #tpu.memory_space<vmem>>, vector<128x32xf32>
    %2 = arith.mulf %0, %0 : vector<8x32xf32>
    %cst = arith.constant dense<0.000000e+00> : vector<8xf32>
    %3 = vector.multi_reduction <add>, %2, %cst [1] : vector<8x32xf32> to vector<8xf32>
    %4 = vector.shape_cast %3 : vector<8xf32> to vector<8x1xf32>
    %cst_3 = arith.constant 1.000000e-24 : f32
    %5 = vector.broadcast %cst_3 : f32 to vector<8x1xf32>
    %6 = arith.maximumf %4, %5 : vector<8x1xf32>
    %7 = math.rsqrt %6 : vector<8x1xf32>
    %8 = arith.mulf %1, %1 : vector<128x32xf32>
    %cst_4 = arith.constant dense<0.000000e+00> : vector<128xf32>
    %9 = vector.multi_reduction <add>, %8, %cst_4 [1] : vector<128x32xf32> to vector<128xf32>
    %10 = vector.shape_cast %9 : vector<128xf32> to vector<128x1xf32>
    %cst_5 = arith.constant 1.000000e-24 : f32
    %11 = vector.broadcast %cst_5 : f32 to vector<128x1xf32>
    %12 = arith.maximumf %10, %11 : vector<128x1xf32>
    %13 = math.rsqrt %12 : vector<128x1xf32>
    %14 = vector.broadcast %13 : vector<128x1xf32> to vector<128x32xf32>
    %15 = arith.mulf %1, %14 : vector<128x32xf32>
    %cst_6 = arith.constant dense<0.000000e+00> : vector<8x128xf32>
    %16 = tpu.matmul %0, %15, %cst_6 {dimension_numbers = #tpu.dot_dimension_numbers<[1], [1], [0], [0], [0, 0, 1, 0], [], []>} : vector<8x32xf32>, vector<128x32xf32>, vector<8x128xf32> -> vector<8x128xf32>
    %17 = vector.broadcast %7 : vector<8x1xf32> to vector<8x128xf32>
    %18 = arith.mulf %16, %17 : vector<8x128xf32>
    %19 = arith.mulf %18, %18 : vector<8x128xf32>
    %cst_7 = arith.constant 1.000000e+00 : f32
    %20 = vector.broadcast %cst_7 : f32 to vector<8x128xf32>
    %21 = arith.subf %20, %19 : vector<8x128xf32>
    %cst_8 = arith.constant 0.000000e+00 : f32
    %cst_9 = arith.constant 1.000000e+00 : f32
    %22 = vector.broadcast %cst_8 : f32 to vector<8x128xf32>
    %23 = arith.maximumf %22, %21 : vector<8x128xf32>
    %24 = vector.broadcast %cst_9 : f32 to vector<8x128xf32>
    %25 = arith.minimumf %24, %23 : vector<8x128xf32>
    %26 = math.sqrt %25 : vector<8x128xf32>
    %cst_10 = arith.constant 0.87758255 : f32
    %27 = vector.broadcast %cst_10 : f32 to vector<8x128xf32>
    %28 = arith.mulf %18, %27 : vector<8x128xf32>
    %cst_11 = arith.constant 0.47942555 : f32
    %29 = vector.broadcast %cst_11 : f32 to vector<8x128xf32>
    %30 = arith.mulf %26, %29 : vector<8x128xf32>
    %31 = arith.subf %28, %30 : vector<8x128xf32>
    %cst_12 = arith.constant -0.87758255 : f32
    %32 = vector.broadcast %cst_12 : f32 to vector<8x128xf32>
    %33 = arith.cmpf ogt, %18, %32 : vector<8x128xf32>
    %cst_13 = arith.constant 0.239712775 : f32
    %34 = vector.broadcast %cst_13 : f32 to vector<8x128xf32>
    %35 = arith.subf %18, %34 : vector<8x128xf32>
    %36 = arith.select %33, %31, %35 : vector<8x128xi1>, vector<8x128xf32>
    %c0_14 = arith.constant 0 : index
    %c0_15 = arith.constant 0 : index
    %37 = vector.load %arg4[%c0_14, %c0_15] : memref<8x1xi32, #tpu.memory_space<vmem>>, vector<8x1xi32>
    %c128_i32 = arith.constant 128 : i32
    %38 = arith.muli %arg1, %c128_i32 : i32
    %39 = tpu.iota {dimensions = array<i32: 1>} : vector<8x128xi32>
    %40 = vector.broadcast %38 : i32 to vector<8x128xi32>
    %41 = arith.addi %40, %39 : vector<8x128xi32>
    %42 = vector.broadcast %37 : vector<8x1xi32> to vector<8x128xi32>
    %43 = arith.cmpi eq, %41, %42 : vector<8x128xi32>
    %44 = arith.select %43, %36, %18 : vector<8x128xi1>, vector<8x128xf32>
    %cst_16 = arith.constant 3.000000e+01 : f32
    %45 = vector.broadcast %cst_16 : f32 to vector<8x128xf32>
    %46 = arith.mulf %44, %45 : vector<8x128xf32>
    %c0_17 = arith.constant 0 : index
    %c0_18 = arith.constant 0 : index
    %47 = vector.load %arg5[%c0_17, %c0_18] : memref<8x128xf32, #tpu.memory_space<vmem>>, vector<8x128xf32>
    tpu.vector_store %arg5[%c0_17, %c0_18], %46 {strides = array<i32>} : memref<8x128xf32, #tpu.memory_space<vmem>>, vector<8x128xf32>,
    return
  }
  func.func @transform_0(%arg0: i32, %arg1: i32) -> (i32, i32) {
    %c0_i32 = arith.constant 0 : i32
    %c0_i32_0 = arith.constant 0 : i32
    return %arg0, %c0_i32 : i32, i32
  }
  func.func @transform_1(%arg0: i32, %arg1: i32) -> (i32, i32) {
    %c0_i32 = arith.constant 0 : i32
    %c0_i32_0 = arith.constant 0 : i32
    return %arg1, %c0_i32 : i32, i32
  }
  func.func @transform_2(%arg0: i32, %arg1: i32) -> (i32, i32) {
    %c0_i32 = arith.constant 0 : i32
    %c0_i32_0 = arith.constant 0 : i32
    return %arg0, %c0_i32 : i32, i32
  }
  func.func @transform_3(%arg0: i32, %arg1: i32) -> (i32, i32) {
    %c0_i32 = arith.constant 0 : i32
    return %arg0, %arg1 : i32, i32
  }
}

</mosaic_0001>

<bundles_post_ra>
// kernel: tpu_custom_call.1
= control target key start
LH: loop header
LB: loop body
LE: loop exit
PB: predicated region body
PF: predicated region fallthrough
CT: control target
= control target key end

     0   :  { %8 = vsyncpa [#allocation3], 0  ;;  %s1219_s0 = inlined_call_operand.vmem [shape: f32[24,32], index: 0, kind: input, shape index: {}]   ;;  %s1220_s1 = inlined_call_operand.vmem [shape: f32[256,32], index: 1, kind: input, shape index: {}]   ;;  %s1221_s2 = inlined_call_operand.vmem [shape: s32[24,1], index: 2, kind: input, shape index: {}]   ;;  %s1222_s3 = inlined_call_operand.hbm [shape: f32[24,256], index: 3, kind: output, shape index: {}]  }
   0x1   :  { %10 = vsyncpa [#allocation3 + $0x1], 0  ;;  %s935_s12 = smov 0   ;;  %s937_s13 = smov 0  }
   0x2   :  { %s939_s14 = smov 0   ;;  %s941_s15 = smov 0  }
   0x3   :  { %s943_s16 = smov 0   ;;  %s945_s17 = smov 0  }
   0x4   :  { %s947_s18 = smov 0   ;;  %s949_s19 = smov 0  }
   0x5 LB: > { %s619_s20 = sadd.s32 4294967295, %s909_s19   ;;  %s620_s21 = sadd.s32 4294967294, %s909_s19   ;;  %s909_s19 = sphi %s949_s19, %s16_s19   ;;  %s905_s18 = sphi %s947_s18, %s1231_s18   ;;  %s901_s17 = sphi %s945_s17, %s1230_s17   ;;  %s897_s16 = sphi %s943_s16, %s1229_s16   ;;  %s893_s15 = sphi %s941_s15, %s1228_s15   ;;  %s889_s14 = sphi %s939_s14, %s1227_s14   ;;  %s885_s13 = sphi %s937_s13, %s1226_s13   ;;  %s881_s12 = sphi %s935_s12, %s1225_s12  }
   0x6   : > { %s25_s22 = sadd.s32 1, %s901_s17  ;;  %s28_s23 = sadd.s32 1, %s905_s18 }
   0x7   : > { %p26_p0 = scmp.ge.s32.totalorder %s25_s22, 2  ;;  %p125_p1 = scmp.ne.s32.totalorder %s889_s14, %s885_s13 }
   0x8   : > { %p126_p2 = scmp.eq.s32.totalorder %s619_s20, 5  ;;  %p131_p5 = scmp.ne.s32.totalorder %s885_s13, %s881_s12 }
   0x9   : > { %s1233_s22 = smov (%p26_p0, %s25_s22), 0  ;;  %s1235_s23 = smov (!%p26_p0, %s28_s23), %s905_s18 }
   0xa   : > { %s111_s24 = ssub.s32 %s901_s17, %s1233_s22  ;;  %p986_p3 = por %p126_p2, %p125_p1 }
   0xb   : > { %p30_p4 = scmp.ge.s32.totalorder %s1235_s23, 3  ;;  %p132_p6 = scmp.eq.s32.totalorder %s620_s21, 5 }
   0xc   : > { %p623_p7 = scmp.ge.s32.totalorder %s909_s19, 1  ;;  %p173_p9 = scmp.lt.s32.totalorder %s909_s19, 7 }
   0xd   : > { %s1237_s23 = smov (%p30_p4, %s1235_s23), 0  ;;  %p995_p8 = por %p132_p6, %p131_p5 }
   0xe   : > { %s110_s27 = ssub.s32 %s905_s18, %s1237_s23  ;;  %s115_s28 = sadd.s32 1, %s889_s14 }
   0xf   : > { %s112_s29 = sor.u32 %s111_s24, %s110_s27  ;;  %p174_p10 = pnand %p623_p7, %p173_p9 }
  0x10   : > { %p113_p11 = scmp.eq.s32.totalorder %s112_s29, 0  ;;  %s626_s4 = sshll.u32 (!%p174_p10), %s893_s15, 4 }
  0x11   : > { %177 = sbr.rel (%p174_p10) target bundleno = 490 (0x1ea), region = 32  ;;  %p210_p12 = scmp.lt.s32.totalorder (!%p174_p10), %s626_s4, 31 }
  0x12   : > { %s1004_s30 = scalar_select %p113_p11, %s889_s14, %s115_s28  }
  0x13   : > { %p205_p13 = scmp.lt.s32.totalorder (!%p174_p10), %s897_s16, 2  ;;  %s647_s29 = sshll.u32 (!%p174_p10), %s893_s15, 7 }
  0x14   : > { %s649_s6 = sshll.u32 (!%p174_p10), %s897_s16, 1 }
  0x15   : > { %s519_s7 = sadd.s32 (!%p174_p10), %s893_s15, %s649_s6  ;;  %s914_s15 = smov (!%p174_p10), [#allocation2]  }
  0x16   : > { %s1239_s4 = smov (!%p210_p12, %s626_s4), 31  ;;  %vm237_vm0 = vcmask 261120   ;;  %v911_v46 = vmov 0.0   ;;  %vm912_vm1 = vmmov 0   ;;  %v913_v51 = vmov 0   ;;  %s821_s27 = sshll.u32 %s914_s15, 4  ;;  %s822_s27 = int_to_ptr.vmem [resolvable:$false] %s821_s27 }
  0x17   : > { %s627_s5 = sshll.u32 %s1239_s4, 3  ;;  %670 = vmatprep.subr.mxu0 %v911_v46  ;;  %702 = vmatprep.mubr.msk.f32.mxu0 %vm912_vm1, %v911_v46  ;;  %s202_s4 = sand.u32 1, %s885_s13  }
  0x18   : > { %s1010_s8 = scalar_lea.vmem %s1220_s1, %s627_s5  ;;  %779 = vset.pattern.permute.xlu1 %v913_v51  ;;  %780 = vset.pattern.permute.xlu0 %v913_v51  ;;  %s624_s5 = sshll.u32 %s202_s4, 3 }
  0x19   : > { %v1013_v0 = vld [vmem:[%s1010_s8 + $0x78] sm:$0xff]  ;;  %v1016_v1 = vld [vmem:[%s1010_s8 + $0x70] sm:$0xff]  ;;  %v1019_v2 = vld [vmem:[%s1010_s8 + $0x68] sm:$0xff]  ;;  %s206_s9 = scalar_select %p205_p13, %s897_s16, 2 }
  0x1a   : > { %v258_v3 = vmul.f32 %v1013_v0, %v1013_v0  ;;  %v257_v4 = vmul.f32 %v1016_v1, %v1016_v1  ;;  %v256_v5 = vmul.f32 %v1019_v2, %v1019_v2  ;;  %v1028_v6 = vld [vmem:[%s1010_s8 + $0x60] sm:$0xff]  ;;  %v1033_v8 = vld [vmem:[%s1010_s8 + $0x58] sm:$0xff]  ;;  %v1036_v9 = vld [vmem:[%s1010_s8 + $0x50] sm:$0xff] }
  0x1b   : > { %v255_v7 = vmul.f32 %v1028_v6, %v1028_v6  ;;  %v254_v14 = vmul.f32 %v1033_v8, %v1033_v8  ;;  %v253_v15 = vmul.f32 %v1036_v9, %v1036_v9  ;;  %v1047_v16 = vld [vmem:[%s1010_s8 + $0x48] sm:$0xff]  ;;  %v1050_v17 = vld [vmem:[%s1010_s8 + $0x40] sm:$0xff]  ;;  %v1059_v22 = vld [vmem:[%s1010_s8 + $0x38] sm:$0xff]  ;;  %s625_s10 = sshll.u32 %s206_s9, 3  ;;  %s204_s9 = scalar_lea.vmem [#allocation2], %s624_s5 }
  0x1c   : > { %v304_v10 = vsel %vm237_vm0, %v258_v3, 0.0  ;;  %v298_v11 = vsel %vm237_vm0, %v256_v5, 0.0  ;;  %v301_v12 = vsel %vm237_vm0, %v257_v4, 0.0  ;;  %v252_v20 = vmul.f32 %v1047_v16, %v1047_v16  ;;  %v1062_v23 = vld [vmem:[%s1010_s8 + $0x30] sm:$0xff]  ;;  %v1071_v28 = vld [vmem:[%s1010_s8 + $0x28] sm:$0xff]  ;;  %v1074_v29 = vld [vmem:[%s1010_s8 + $0x20] sm:$0xff]  ;;  %s208_s21 = scalar_lea.vmem %s1219_s0, %s625_s10  ;;  %s218_s28 = scalar_lea.vmem %s1221_s2, %s625_s10 }
  0x1d   : > { %305 = vadd.xlane.f32.xlu0 %v304_v10  ;;  %299 = vadd.xlane.f32.xlu1 %v298_v11  ;;  %v295_v13 = vsel %vm237_vm0, %v255_v7, 0.0  ;;  %v292_v18 = vsel %vm237_vm0, %v254_v14, 0.0  ;;  %v289_v19 = vsel %vm237_vm0, %v253_v15, 0.0  ;;  %v251_v21 = vmul.f32 %v1050_v17, %v1050_v17  ;;  %v1083_v34 = vld [vmem:[%s1010_s8 + $0x18] sm:$0xff]  ;;  %v1086_v35 = vld [vmem:[%s1010_s8 + $0x10] sm:$0xff]  ;;  %v1095_v40 = vld [vmem:[%s1010_s8 + $0x8] sm:$0xff] }
  0x1e   : > { %v286_v24 = vsel %vm237_vm0, %v252_v20, 0.0  ;;  %v250_v26 = vmul.f32 %v1059_v22, %v1059_v22  ;;  %v249_v27 = vmul.f32 %v1062_v23, %v1062_v23  ;;  %v248_v32 = vmul.f32 %v1071_v28, %v1071_v28  ;;  %v1098_v41 = vld [vmem:[%s1010_s8] sm:$0xff]  ;;  %s650_s8 = sshll.u32 %s519_s7, 7  ;;  %s523_s10 = sshll.u32 %s204_s9, 4  ;;  %s524_s10 = int_to_ptr.vmem [resolvable:$true] %s523_s10 }
  0x1f   : > { %v283_v25 = vsel %vm237_vm0, %v251_v21, 0.0  ;;  %v247_v33 = vmul.f32 %v1074_v29, %v1074_v29  ;;  %v246_v38 = vmul.f32 %v1083_v34, %v1083_v34  ;;  %v245_v39 = vmul.f32 %v1086_v35, %v1086_v35  ;;  %v1115_v49 = vld [vmem:[%s208_s21] sm:$0xff]  ;;  %s521_s20 = scalar_lea.hbm %s1222_s3, %s650_s8  ;;  %s508_s21 = scalar_lea.sflag [#allocation3], %s202_s4 }
  0x20   : > { %v280_v30 = vsel %vm237_vm0, %v250_v26, 0.0  ;;  %v277_v31 = vsel %vm237_vm0, %v249_v27, 0.0  ;;  %v274_v36 = vsel %vm237_vm0, %v248_v32, 0.0  ;;  %v244_v44 = vmul.f32 %v1095_v40, %v1095_v40  ;;  %v494_v52 = vld [vmem:[%s218_s28] sm:$0xff]  ;;  %s817_s24 = scalar_lea.vmem %s524_s10, 128  ;;  %s823_s28 = scalar_lea.vmem %s822_s27, 256 }
  0x21   : > { %302 = vadd.xlane.f32.xlu0 %v301_v12  ;;  %296 = vadd.xlane.f32.xlu1 %v295_v13  ;;  %v271_v37 = vsel %vm237_vm0, %v247_v33, 0.0  ;;  %v268_v42 = vsel %vm237_vm0, %v246_v38, 0.0  ;;  %v265_v43 = vsel %vm237_vm0, %v245_v39, 0.0  ;;  %v243_v45 = vmul.f32 %v1098_v41, %v1098_v41  ;;  %p818_p0 = scmp.ne.s32.totalorder %s524_s10, %s817_s24  ;;  %p824_p4 = scmp.lt.s32.totalorder %s524_s10, %s822_s27 }
  0x22   : > { %v262_v47 = vsel %vm237_vm0, %v244_v44, 0.0  ;;  %v236_v50 = vmul.f32 %v1115_v49, %v1115_v49  ;;  %p825_p5 = scmp.lt.s32.totalorder %s823_s28, %s817_s24 }
  0x23   : > { %v259_v48 = vsel %vm237_vm0, %v243_v45, 0.0  ;;  %p819_p1 = pnand %p818_p0, %p986_p3 }
  0x24   : > { %v238_v53 = vsel %vm237_vm0, %v236_v50, 0.0  ;;  %p826_p6 = por %p825_p5, %p824_p4 }
  0x25   : > { %293 = vadd.xlane.f32.xlu0 %v292_v18  ;;  %290 = vadd.xlane.f32.xlu1 %v289_v19  ;;  %p820_p2 = pneg %p819_p1 }
  0x27   : > { %p827_p7 = pnand %p826_p6, %p820_p2 }
  0x29   : > { %287 = vadd.xlane.f32.xlu0 %v286_v24  ;;  %284 = vadd.xlane.f32.xlu1 %v283_v25 }
  0x2d   : > { %281 = vadd.xlane.f32.xlu0 %v280_v30  ;;  %278 = vadd.xlane.f32.xlu1 %v277_v31 }
  0x31   : > { %275 = vadd.xlane.f32.xlu0 %v274_v36  ;;  %272 = vadd.xlane.f32.xlu1 %v271_v37 }
  0x35   : > { %269 = vadd.xlane.f32.xlu0 %v268_v42  ;;  %266 = vadd.xlane.f32.xlu1 %v265_v43 }
  0x39   : > { %263 = vadd.xlane.f32.xlu0 %v262_v47  ;;  %260 = vadd.xlane.f32.xlu1 %v259_v48 }
  0x3d   : > { %239 = vadd.xlane.f32.xlu0 %v238_v53 }
  0x4a   : > { %501 = vperm.xlu1 %779, %v494_v52  }
  0xa6   : > { %v306_v54 = vpop.xlane.xlu0 %305  ;;  %v300_v55 = vpop.xlane.xlu1 %299 }
  0xa7   : > { %v322_v56 = vmax.f32 %v306_v54, 1e-24  ;;  %v320_v57 = vmax.f32 %v300_v55, 1e-24 }
  0xa9   : > { %781 = vrsqrt.f32 %v322_v56 }
  0xaa   : > { %v303_v58 = vpop.xlane.xlu0 %302  ;;  %v297_v59 = vpop.xlane.xlu1 %296  ;;  %783 = vrsqrt.f32 %v320_v57 }
  0xab   : > { %v321_v60 = vmax.f32 %v303_v58, 1e-24  ;;  %v319_v61 = vmax.f32 %v297_v59, 1e-24 }
  0xad   : > { %785 = vrsqrt.f32 %v321_v60 }
  0xae   : > { %v294_v62 = vpop.xlane.xlu0 %293  ;;  %787 = vrsqrt.f32 %v319_v61  ;;  %v291_v3 = vpop.xlane.xlu1 %290 }
  0xaf   : > { %v318_v63 = vmax.f32 %v294_v62, 1e-24  ;;  %v317_v4 = vmax.f32 %v291_v3, 1e-24 }
  0xb1   : > { %789 = vrsqrt.f32 %v318_v63 }
  0xb2   : > { %v288_v7 = vpop.xlane.xlu0 %287  ;;  %791 = vrsqrt.f32 %v317_v4  ;;  %v285_v14 = vpop.xlane.xlu1 %284 }
  0xb3   : > { %v316_v12 = vmax.f32 %v288_v7, 1e-24  ;;  %v315_v19 = vmax.f32 %v285_v14, 1e-24  ;;  %v498_v7 = vstv %s647_s29 }
  0xb5   : > { %793 = vrsqrt.f32 %v316_v12 }
  0xb6   : > { %v782_v5 = vpop.eup %781  ;;  %795 = vrsqrt.f32 %v315_v19 }
  0xb7   : > { %v354_v10 = vmul.f32 %v782_v5, %v1013_v0  ;;  %v784_v11 = vpop.eup %783  ;;  %v282_v0 = vpop.xlane.xlu0 %281 }
  0xb8   : > { %v352_v18 = vmul.f32 %v784_v11, %v1019_v2  ;;  %v314_v24 = vmax.f32 %v282_v0, 1e-24 }
  0xb9   : > { %671 = vmatpush3.xpose.msk.msra.mxu0 %vm237_vm0, %v354_v10 }
  0xba   : > { %v786_v13 = vpop.eup %785  ;;  %672 = vmatprep.subr.mxu0 %v911_v46  ;;  %797 = vrsqrt.f32 %v314_v24 }
  0xbb   : > { %v353_v15 = vmul.f32 %v786_v13, %v1016_v1  ;;  %v788_v20 = vpop.eup %787  ;;  %v279_v1 = vpop.xlane.xlu1 %278 }
  0xbc   : > { %v351_v21 = vmul.f32 %v788_v20, %v1028_v6  ;;  %v313_v26 = vmax.f32 %v279_v1, 1e-24  ;;  %v276_v30 = vpop.xlane.xlu0 %275 }
  0xbd   : > { %673 = vmatpush3.xpose.msk.msra.mxu0 %vm237_vm0, %v353_v15  ;;  %v312_v31 = vmax.f32 %v276_v30, 1e-24 }
  0xbe   : > { %674 = vmatprep.subr.mxu0 %v911_v46  ;;  %v790_v25 = vpop.eup %789  ;;  %799 = vrsqrt.f32 %v313_v26 }
  0xbf   : > { %v350_v2 = vmul.f32 %v790_v25, %v1033_v8  ;;  %v792_v27 = vpop.eup %791  ;;  %v273_v33 = vpop.xlane.xlu1 %272  ;;  %801 = vrsqrt.f32 %v312_v31 }
  0xc0   : > { %v349_v6 = vmul.f32 %v792_v27, %v1036_v9  ;;  %v311_v36 = vmax.f32 %v273_v33, 1e-24  ;;  %v270_v38 = vpop.xlane.xlu0 %269 }
  0xc1   : > { %675 = vmatpush3.xpose.msk.msra.mxu0 %vm237_vm0, %v352_v18  ;;  %v310_v39 = vmax.f32 %v270_v38, 1e-24 }
  0xc2   : > { %676 = vmatprep.subr.mxu0 %v911_v46  ;;  %v794_v32 = vpop.eup %793  ;;  %803 = vrsqrt.f32 %v311_v36 }
  0xc3   : > { %v348_v8 = vmul.f32 %v794_v32, %v1047_v16  ;;  %v796_v37 = vpop.eup %795  ;;  %v267_v43 = vpop.xlane.xlu1 %266  ;;  %805 = vrsqrt.f32 %v310_v39 }
  0xc4   : > { %v347_v9 = vmul.f32 %v796_v37, %v1050_v17  ;;  %v309_v44 = vmax.f32 %v267_v43, 1e-24  ;;  %v264_v47 = vpop.xlane.xlu0 %263 }
  0xc5   : > { %677 = vmatpush3.xpose.msk.msra.mxu0 %vm237_vm0, %v351_v21  ;;  %v308_v48 = vmax.f32 %v264_v47, 1e-24 }
  0xc6   : > { %678 = vmatprep.subr.mxu0 %v911_v46  ;;  %807 = vrsqrt.f32 %v309_v44 }
  0xc7   : > { %v798_v42 = vpop.eup %797  ;;  %v261_v51 = vpop.xlane.xlu1 %260  ;;  %809 = vrsqrt.f32 %v308_v48 }
  0xc8   : > { %v346_v16 = vmul.f32 %v798_v42, %v1059_v22  ;;  %v307_v52 = vmax.f32 %v261_v51, 1e-24 }
  0xc9   : > { %679 = vmatpush3.xpose.msk.msra.mxu0 %vm237_vm0, %v350_v2 }
  0xca   : > { %680 = vmatprep.subr.mxu0 %v911_v46  ;;  %811 = vrsqrt.f32 %v307_v52 }
  0xcb   : > { %v800_v45 = vpop.eup %799  ;;  %v502_v14 = vpop.permute.xlu1 %501 }
  0xcc   : > { %v345_v17 = vmul.f32 %v800_v45, %v1062_v23  ;;  %v802_v50 = vpop.eup %801 }
  0xcd   : > { %681 = vmatpush3.xpose.msk.msra.mxu0 %vm237_vm0, %v349_v6  ;;  %v344_v22 = vmul.f32 %v802_v50, %v1071_v28 }
  0xce   : > { %682 = vmatprep.subr.mxu0 %v911_v46 }
  0xcf   : > { %v804_v53 = vpop.eup %803 }
  0xd0   : > { %v343_v54 = vmul.f32 %v804_v53, %v1074_v29  ;;  %v806_v23 = vpop.eup %805 }
  0xd1   : > { %683 = vmatpush3.xpose.msk.msra.mxu0 %vm237_vm0, %v348_v8  ;;  %v342_v55 = vmul.f32 %v806_v23, %v1083_v34 }
  0xd2   : > { %684 = vmatprep.subr.mxu0 %v911_v46 }
  0xd3   : > { %v808_v56 = vpop.eup %807 }
  0xd4   : > { %v341_v28 = vmul.f32 %v808_v56, %v1086_v35  ;;  %v810_v57 = vpop.eup %809  ;;  %v240_v35 = vpop.xlane.xlu0 %239 }
  0xd5   : > { %685 = vmatpush3.xpose.msk.msra.mxu0 %vm237_vm0, %v347_v9  ;;  %v340_v29 = vmul.f32 %v810_v57, %v1095_v40  ;;  %v241_v59 = vmax.f32 %v240_v35, 1e-24 }
  0xd6   : > { %686 = vmatprep.subr.mxu0 %v911_v46 }
  0xd7   : > { %v812_v58 = vpop.eup %811  ;;  %813 = vrsqrt.f32 %v241_v59 }
  0xd8   : > { %v339_v34 = vmul.f32 %v812_v58, %v1098_v41 }
  0xd9   : > { %687 = vmatpush3.xpose.msk.msra.mxu0 %vm237_vm0, %v346_v16 }
  0xda   : > { %688 = vmatprep.subr.mxu0 %v911_v46 }
  0xdd   : > { %689 = vmatpush3.xpose.msk.msra.mxu0 %vm237_vm0, %v345_v17 }
  0xde   : > { %690 = vmatprep.subr.mxu0 %v911_v46 }
  0xe1   : > { %691 = vmatpush3.xpose.msk.msra.mxu0 %vm237_vm0, %v344_v22 }
  0xe2   : > { %692 = vmatprep.subr.mxu0 %v911_v46 }
  0xe4   : > { %v814_v40 = vpop.eup %813 }
  0xe5   : > { %693 = vmatpush3.xpose.msk.msra.mxu0 %vm237_vm0, %v343_v54 }
  0xe6   : > { %694 = vmatprep.subr.mxu0 %v911_v46 }
  0xe9   : > { %695 = vmatpush3.xpose.msk.msra.mxu0 %vm237_vm0, %v342_v55 }
  0xea   : > { %696 = vmatprep.subr.mxu0 %v911_v46 }
  0xed   : > { %697 = vmatpush3.xpose.msk.msra.mxu0 %vm237_vm0, %v341_v28 }
  0xee   : > { %698 = vmatprep.subr.mxu0 %v911_v46 }
  0xf1   : > { %699 = vmatpush3.xpose.msk.msra.mxu0 %vm237_vm0, %v340_v29 }
  0xf2   : > { %700 = vmatprep.subr.mxu0 %v911_v46  ;;  %v496_v46 = vlaneseq }
  0xf4   : > { %v497_v5 = vand.u32 127, %v496_v46 }
  0xf5   : > { %701 = vmatpush3.xpose.msk.msra.mxu0 %vm237_vm0, %v339_v34 }
  0xf6   : > { %v499_v12 = vadd.s32 %v498_v7, %v497_v5 }
  0xf8   : > { %703 = vmatmul.mubr.msk.f32.vlgmr.msra.gmra.mxu0 %vm237_vm0, %v1115_v49  ;;  %vm503_vm4 = vcmp.eq.s32.totalorder %v499_v12, %v502_v14 }
 0x1b8   : > { %v472_v60 = vpop.f32.mrf.mxu0 }
 0x1b9   : > { %v476_v61 = vmul.f32 %v814_v40, %v472_v60 }
 0x1ba   : > { %v704_v62 = vpop.f32.mrf.mxu0 }
 0x1bb   : > { %v477_v63 = vmul.f32 %v476_v61, %v476_v61  ;;  %v488_v18 = vmul.f32 0.87758255, %v476_v61  ;;  %v646_v0 = vadd.f32 -0.23971277, %v476_v61  ;;  %vm491_vm5 = vcmp.gt.f32.partialorder %v476_v61, -0.87758255 }
 0x1bd   : > { %v478_v3 = vsub.f32 1.0, %v477_v63 }
 0x1bf   : > { %v479_v41 = vmax.f32 %v478_v3, 0.0 }
 0x1c1   : > { %v480_v4 = vmin.f32 %v479_v41, 1.0 }
 0x1c3   : > { %815 = vrsqrt.f32 %v480_v4  ;;  %vm483_vm2 = vcmp.eq.f32.partialorder %v480_v4, inf  ;;  %v486_v11 = vand.u32 2147483648, %v480_v4  ;;  %vm485_vm3 = vcmp.eq.f32.partialorder %v480_v4, 0.0 }
 0x1d0   : > { %v816_v49 = vpop.eup %815 }
 0x1d1   : > { %v482_v10 = vmul.f32 %v816_v49, %v480_v4 }
 0x1d3   : > { %v484_v13 = vsel %vm483_vm2, %v480_v4, %v482_v10 }
 0x1d4   : > { %v487_v15 = vsel %vm485_vm3, %v486_v11, %v484_v13 }
 0x1d5   : > { %v489_v19 = vmul.f32 0.47942555, %v487_v15 }
 0x1d7   : > { %v490_v20 = vsub.f32 %v488_v18, %v489_v19 }
 0x1d9   : > { %v493_v21 = vsel %vm491_vm5, %v490_v20, %v646_v0 }
 0x1da   : > { %v504_v24 = vsel %vm503_vm4, %v493_v21, %v476_v61 }
 0x1db   : > { %v505_v25 = vmul.f32 30.0, %v504_v24 }
 0x1dd   : > { %506 = vst [vmem:[%s204_s9] sm:$0xff] %v505_v25 }
 0x1de   : > { %830 = shalt.err (!%p827_p7)
}
 0x1df   : > { %s831_s29 = scalar_lea.hbm %s521_s20, 128  ;;  %s835_s6 = scalar_lea.hbm %s1222_s3, 768 }
 0x1e0   : > { %p832_p9 = scmp.ne.s32.totalorder %s521_s20, %s831_s29  ;;  %p836_p12 = scmp.lt.s32.totalorder %s521_s20, %s1222_s3 }
 0x1e1   : > { %p837_p13 = scmp.lt.s32.totalorder %s835_s6, %s831_s29 }
 0x1e2   : > { %p833_p10 = pnand %p832_p9, %p986_p3 }
 0x1e3   : > { %p838_p0 = por %p837_p13, %p836_p12 }
 0x1e4   : > { %p834_p11 = pneg %p833_p10 }
 0x1e6   : > { %p839_p1 = pnand %p838_p0, %p834_p11 }
 0x1e8   : > { %842 = shalt.err (!%p839_p1)
}
 0x1e9   : > { %705 = dma.vmem_to_hbm [thread:$0]  (%p986_p3), %s524_s10, 128, %s521_s20, %s508_s21  }
 0x1ea PF: > { %p711_p2 = scmp.ge.s32.totalorder %s909_s19, 2  ;;  %s535_s9 = sand.u32 1, %s881_s12  }
 0x1eb   : > { %s536_s16 = scalar_lea.sflag [#allocation3], %s535_s9 }
 0x1ec   : > { %p708_p4 = pnand %p711_p2, %p995_p8 }
 0x1ee   : > { %p709_p5 = pneg %p708_p4 }
 0x1f0   : > { %876 = dma.done.wait (%p709_p5), %s536_s16, 128  }
 0x1f1   : > { %878 = vsyncadd (%p709_p5), %s536_s16, 4294967168  ;;  %s16_s19 = sadd.s32 1, %s909_s19   ;;  %s1225_s12 = smov %s885_s13 }
 0x1f2   : > { %p13_p6 = scmp.ge.s32.totalorder %s16_s19, 8   ;;  %s1226_s13 = smov %s889_s14 }
 0x1f3   : > { %s1227_s14 = smov %s1004_s30  ;;  %s1228_s15 = smov %s901_s17 }
 0x1f4   : > { %s1229_s16 = smov %s905_s18  ;;  %s1230_s17 = smov %s1233_s22 }
 0x1f5   : > { %s1231_s18 = smov %s1237_s23  ;;  %15 = sbr.rel (!%p13_p6) target bundleno = 5 (0x5), region = 73 }
 0x1fa   :  { %541 = vsyncpa [#allocation3], 1 }
 0x1fb   :  { %543 = vsyncpa [#allocation3 + $0x1], 1 }

</bundles_post_ra>
